<compile_context>
chip_gen: v7x
topology: tpu7x:2x2x1
jax: 0.10.0
libtpu: 0.0.40
codegen_flags: <defaults>
</compile_context>

<pallas_src>
import itertools

import jax
import jax.numpy as jnp
from jax import lax
from jax.experimental import pallas as pl
from jax.experimental.pallas import tpu as pltpu


def _choose_tile(dim, target, align=128):
    """Largest `align`-multiple tile <= target that divides dim, else full dim."""
    if dim <= target:
        return dim
    t = (target // align) * align
    while t >= align:
        if dim % t == 0:
            return t
        t -= align
    # TODO(synk): large dims that are not 128-divisible fall back to a single
    # full block along that axis (correct, but no pipelining there).
    return dim


def _make_kernel(segments, tk):
    """Kernel for one (OUT-tile j, IN-tile k) grid step.

    refs: x (B, tk), w (tn, tk), c (S, tn), bias (1, tn) -> out (B, tn);
    scratch: acc (B, tn) f32.
    """

    def kernel(x_ref, w_ref, c_ref, b_ref, o_ref, acc_ref):
        k = pl.program_id(1)

        @pl.when(k == 0)
        def _init():
            acc_ref[...] = jnp.zeros_like(acc_ref)

        x = x_ref[...]                                        # (B, tk)
        w = w_ref[...]                                        # (tn, tk) raw weight
        base = k * tk
        col = lax.broadcasted_iota(jnp.int32, (1, tk), 1) + base

        for t, (lo, hi) in enumerate(segments):
            # Only touch the MXU if segment [lo, hi) overlaps this IN tile.
            @pl.when(jnp.logical_and(base < hi, base + tk > lo))
            def _acc(t=t, lo=lo, hi=hi):
                m = jnp.logical_and(col >= lo, col < hi)
                xm = x * m.astype(x.dtype)                    # cheap VPU mask on x
                part = lax.dot_general(                       # (B, tn) on the MXU
                    xm, w,
                    dimension_numbers=(((1,), (1,)), ((), ())),
                    preferred_element_type=jnp.float32)
                acc_ref[...] += part * c_ref[t:t + 1, :]      # per-output factor

        @pl.when(k == pl.num_programs(1) - 1)
        def _finalize():
            # bias mixture scale == full suffix sum == C[0, :]
            y = acc_ref[...] + b_ref[...].astype(jnp.float32) * c_ref[0:1, :]
            o_ref[...] = y.astype(o_ref.dtype)

    return kernel


def dynamic_linear_mixture(x, weight, bias, mix_weights,
                           in_features_list, out_features_list,
                           use_argmax=False):
    """Exact port of DynamicLinearMixture.forward (bias=True path)."""
    OUT, IN = weight.shape
    orig_lead = x.shape[:-1]
    x2 = x.reshape(-1, IN)
    B = x2.shape[0]

    combos = list(itertools.product(in_features_list, out_features_list))
    K = len(combos)
    assert mix_weights.shape == (K,)

    if use_argmax:
        # ties -> first index, like np.argmax in the PyTorch module
        mix = jax.nn.one_hot(jnp.argmax(mix_weights), K, dtype=jnp.float32)
    else:
        mix = mix_weights.astype(jnp.float32)

    # Tiny suffix-sum mixture factors C (S, OUT), f32; no K x OUT x IN temps.
    u_vals = sorted(set(int(v) for v in in_features_list))
    S = len(u_vals)
    o_idx = jnp.arange(OUT)
    c_rows = []
    for u in u_vals:
        row = jnp.zeros((OUT,), jnp.float32)
        for kc, (ic, oc) in enumerate(combos):
            if ic >= u:
                row = row + mix[kc] * (o_idx < oc).astype(jnp.float32)
        c_rows.append(row)
    cmat = jnp.stack(c_rows, axis=0)                          # (S, OUT), f32

    # Disjoint column segments between consecutive thresholds.
    segments = tuple((0 if t == 0 else u_vals[t - 1], u_vals[t])
                     for t in range(S))

    b2d = bias.reshape(1, OUT)

    # 128-aligned tiles; weight tile <= 512 KiB f32 so double-buffering fits
    # comfortably inside v7x's 64 MiB VMEM (and default scoped limits).
    tn = _choose_tile(OUT, 256)
    tk = _choose_tile(IN, 512)

    # Columns >= max(in_features_list) never contribute -> don't stream them.
    u_max = u_vals[-1]
    n_k = max(1, pl.cdiv(u_max, tk))
    grid = (OUT // tn, n_k)                     # OUT parallel, IN last (reduce)

    out = pl.pallas_call(
        _make_kernel(segments, tk),
        out_shape=jax.ShapeDtypeStruct((B, OUT), x.dtype),
        grid_spec=pltpu.PrefetchScalarGridSpec(
            num_scalar_prefetch=0,
            grid=grid,
            in_specs=[
                pl.BlockSpec((B, tk), lambda j, k: (0, k)),   # x
                pl.BlockSpec((tn, tk), lambda j, k: (j, k)),  # raw weight
                pl.BlockSpec((S, tn), lambda j, k: (0, j)),   # suffix factors C
                pl.BlockSpec((1, tn), lambda j, k: (0, j)),   # bias
            ],
            out_specs=pl.BlockSpec((B, tn), lambda j, k: (0, j)),
            scratch_shapes=[pltpu.VMEM((B, tn), jnp.float32)],
        ),
        compiler_params=pltpu.CompilerParams(
            dimension_semantics=("parallel", "arbitrary")),
    )(x2, weight, cmat, b2d)

    return out.reshape(orig_lead + (OUT,))


def _reference(x, weight, bias, mix_weights, in_features_list, out_features_list,
               use_argmax=False):
    """Pure-JAX reference mirroring the PyTorch module exactly."""
    combos = list(itertools.product(in_features_list, out_features_list))
    if use_argmax:
        mix = jax.nn.one_hot(jnp.argmax(mix_weights), len(combos), dtype=jnp.float32)
    else:
        mix = mix_weights
    conv_w = jnp.zeros_like(weight)
    conv_b = jnp.zeros_like(bias)
    for k, (ic, oc) in enumerate(combos):
        w_k = jnp.zeros_like(weight).at[:oc, :ic].set(weight[:oc, :ic])
        b_k = jnp.zeros_like(bias).at[:oc].set(bias[:oc])
        conv_w = conv_w + mix[k] * w_k
        conv_b = conv_b + mix[k] * b_k
    return x @ conv_w.T + conv_b


if __name__ == "__main__":
    key = jax.random.PRNGKey(0)

    # ---- Config 1: small, matches the module defaults ---------------------
    max_in, max_out = 32, 32
    in_list, out_list = [16, 32], [8, 32]
    batch = 8
    kx, kw, kb, km, key = jax.random.split(key, 5)
    bound = 1.0 / jnp.sqrt(max_in)
    weight = jax.random.uniform(kw, (max_out, max_in), jnp.float32, -bound, bound)
    bias = jax.random.uniform(kb, (max_out,), jnp.float32, -bound, bound)
    x = jax.random.normal(kx, (batch, max_in), jnp.float32)
    mixw = jax.nn.softmax(
        jax.random.normal(km, (len(in_list) * len(out_list),), jnp.float32))

    y = jax.block_until_ready(dynamic_linear_mixture(
        x, weight, bias, mixw, in_list, out_list, use_argmax=False))
    y_ref = _reference(x, weight, bias, mixw, in_list, out_list, use_argmax=False)
    assert jnp.allclose(y, y_ref, atol=1e-4, rtol=1e-4)

    y_am = jax.block_until_ready(dynamic_linear_mixture(
        x, weight, bias, mixw, in_list, out_list, use_argmax=True))
    y_am_ref = _reference(x, weight, bias, mixw, in_list, out_list, use_argmax=True)
    assert jnp.allclose(y_am, y_am_ref, atol=1e-4, rtol=1e-4)

    # ---- Config 2: multi-tile grid with tile-unaligned segment boundaries --
    max_in2, max_out2 = 1024, 512
    in_list2, out_list2 = [256, 768, 1024], [128, 512]
    batch2 = 16
    kx2, kw2, kb2, km2, key = jax.random.split(key, 5)
    bound2 = 1.0 / jnp.sqrt(max_in2)
    weight2 = jax.random.uniform(kw2, (max_out2, max_in2), jnp.float32,
                                 -bound2, bound2)
    bias2 = jax.random.uniform(kb2, (max_out2,), jnp.float32, -bound2, bound2)
    x2 = jax.random.normal(kx2, (batch2, max_in2), jnp.float32)
    mixw2 = jax.nn.softmax(
        jax.random.normal(km2, (len(in_list2) * len(out_list2),), jnp.float32))

    y2 = jax.block_until_ready(dynamic_linear_mixture(
        x2, weight2, bias2, mixw2, in_list2, out_list2, use_argmax=False))
    y2_ref = _reference(x2, weight2, bias2, mixw2, in_list2, out_list2,
                        use_argmax=False)
    assert jnp.allclose(y2, y2_ref, atol=1e-4, rtol=1e-4)

    print("KERNEL_OK")
</pallas_src>

<mosaic_0001>
module attributes {stable_mosaic.version = 11 : i64} {
  func.func @kernel(%arg0: i32, %arg1: i32, %arg2: memref<8x32xf32, #tpu.memory_space<vmem>>, %arg3: memref<32x32xf32, #tpu.memory_space<vmem>>, %arg4: memref<2x32xf32, #tpu.memory_space<vmem>>, %arg5: memref<1x32xf32, #tpu.memory_space<vmem>>, %arg6: memref<8x32xf32, #tpu.memory_space<vmem>>, %arg7: memref<8x32xf32, #tpu.memory_space<vmem>>) attributes {dimension_semantics = [#tpu.dimension_semantics<parallel>, #tpu.dimension_semantics<arbitrary>], iteration_bounds = array<i64: 1, 1>, scalar_prefetch = 0 : i64, scratch_operands = 1 : i64, tpu.core_type = #tpu.core_type<tc>, window_params = [{transform_indices = @transform_0, window_bounds = array<i64: 8, 32>}, {transform_indices = @transform_1, window_bounds = array<i64: 32, 32>}, {transform_indices = @transform_2, window_bounds = array<i64: 2, 32>}, {transform_indices = @transform_3, window_bounds = array<i64: 1, 32>}, {transform_indices = @transform_4, window_bounds = array<i64: 8, 32>}]} {
    %c0_i32 = arith.constant 0 : i32
    %0 = arith.cmpi eq, %arg1, %c0_i32 : i32
    %1 = arith.extui %0 : i1 to i32
    %c0_i32_0 = arith.constant 0 : i32
    %2 = arith.cmpi ne, %1, %c0_i32_0 : i32
    scf.if %2 {
      %cst = arith.constant 0.000000e+00 : f32
      %24 = vector.broadcast %cst : f32 to vector<8x32xf32>
      %c0_13 = arith.constant 0 : index
      %c0_14 = arith.constant 0 : index
      %25 = vector.load %arg7[%c0_13, %c0_14] : memref<8x32xf32, #tpu.memory_space<vmem>>, vector<8x32xf32>
      tpu.vector_store %arg7[%c0_13, %c0_14], %24 {strides = array<i32>} : memref<8x32xf32, #tpu.memory_space<vmem>>, vector<8x32xf32>,
    } else {
    }
    %c0 = arith.constant 0 : index
    %c0_1 = arith.constant 0 : index
    %3 = vector.load %arg2[%c0, %c0_1] : memref<8x32xf32, #tpu.memory_space<vmem>>, vector<8x32xf32>
    %c0_2 = arith.constant 0 : index
    %c0_3 = arith.constant 0 : index
    %4 = vector.load %arg3[%c0_2, %c0_3] : memref<32x32xf32, #tpu.memory_space<vmem>>, vector<32x32xf32>
    %c32_i32 = arith.constant 32 : i32
    %5 = arith.muli %arg1, %c32_i32 : i32
    %6 = tpu.iota {dimensions = array<i32: 1>} : vector<1x32xi32>
    %7 = vector.broadcast %5 : i32 to vector<1x32xi32>
    %8 = arith.addi %6, %7 : vector<1x32xi32>
    %c16_i32 = arith.constant 16 : i32
    %9 = arith.cmpi slt, %5, %c16_i32 : i32
    %c32_i32_4 = arith.constant 32 : i32
    %10 = arith.addi %5, %c32_i32_4 : i32
    %c0_i32_5 = arith.constant 0 : i32
    %11 = arith.cmpi sgt, %10, %c0_i32_5 : i32
    %12 = arith.andi %9, %11 : i1
    %13 = arith.extui %12 : i1 to i32
    %c0_i32_6 = arith.constant 0 : i32
    %14 = arith.cmpi ne, %13, %c0_i32_6 : i32
    scf.if %14 {
      %c0_i32_13 = arith.constant 0 : i32
      %24 = vector.broadcast %c0_i32_13 : i32 to vector<1x32xi32>
      %25 = arith.cmpi sge, %8, %24 : vector<1x32xi32>
      %c16_i32_14 = arith.constant 16 : i32
      %26 = vector.broadcast %c16_i32_14 : i32 to vector<1x32xi32>
      %27 = arith.cmpi slt, %8, %26 : vector<1x32xi32>
      %28 = arith.andi %25, %27 : vector<1x32xi1>
      %29 = arith.extui %28 : vector<1x32xi1> to vector<1x32xi32>
      %30 = arith.sitofp %29 : vector<1x32xi32> to vector<1x32xf32>
      %31 = vector.broadcast %30 : vector<1x32xf32> to vector<8x32xf32>
      %32 = arith.mulf %3, %31 : vector<8x32xf32>
      %cst = arith.constant dense<0.000000e+00> : vector<8x32xf32>
      %33 = tpu.matmul %32, %4, %cst {dimension_numbers = #tpu.dot_dimension_numbers<[1], [1], [0], [0], [0, 0, 1, 0], [], []>} : vector<8x32xf32>, vector<32x32xf32>, vector<8x32xf32> -> vector<8x32xf32>
      %c0_15 = arith.constant 0 : index
      %c0_16 = arith.constant 0 : index
      %34 = vector.load %arg7[%c0_15, %c0_16] : memref<8x32xf32, #tpu.memory_space<vmem>>, vector<8x32xf32>
      %c0_17 = arith.constant 0 : index
      %c0_18 = arith.constant 0 : index
      %35 = vector.load %arg4[%c0_17, %c0_18] : memref<2x32xf32, #tpu.memory_space<vmem>>, vector<1x32xf32>
      %36 = vector.broadcast %35 : vector<1x32xf32> to vector<8x32xf32>
      %37 = arith.mulf %33, %36 : vector<8x32xf32>
      %38 = arith.addf %34, %37 : vector<8x32xf32>
      %c0_19 = arith.constant 0 : index
      %c0_20 = arith.constant 0 : index
      %39 = vector.load %arg7[%c0_19, %c0_20] : memref<8x32xf32, #tpu.memory_space<vmem>>, vector<8x32xf32>
      tpu.vector_store %arg7[%c0_19, %c0_20], %38 {strides = array<i32>} : memref<8x32xf32, #tpu.memory_space<vmem>>, vector<8x32xf32>,
    } else {
    }
    %c32_i32_7 = arith.constant 32 : i32
    %15 = arith.cmpi slt, %5, %c32_i32_7 : i32
    %c32_i32_8 = arith.constant 32 : i32
    %16 = arith.addi %5, %c32_i32_8 : i32
    %c16_i32_9 = arith.constant 16 : i32
    %17 = arith.cmpi sgt, %16, %c16_i32_9 : i32
    %18 = arith.andi %15, %17 : i1
    %19 = arith.extui %18 : i1 to i32
    %c0_i32_10 = arith.constant 0 : i32
    %20 = arith.cmpi ne, %19, %c0_i32_10 : i32
    scf.if %20 {
      %c16_i32_13 = arith.constant 16 : i32
      %24 = vector.broadcast %c16_i32_13 : i32 to vector<1x32xi32>
      %25 = arith.cmpi sge, %8, %24 : vector<1x32xi32>
      %c32_i32_14 = arith.constant 32 : i32
      %26 = vector.broadcast %c32_i32_14 : i32 to vector<1x32xi32>
      %27 = arith.cmpi slt, %8, %26 : vector<1x32xi32>
      %28 = arith.andi %25, %27 : vector<1x32xi1>
      %29 = arith.extui %28 : vector<1x32xi1> to vector<1x32xi32>
      %30 = arith.sitofp %29 : vector<1x32xi32> to vector<1x32xf32>
      %31 = vector.broadcast %30 : vector<1x32xf32> to vector<8x32xf32>
      %32 = arith.mulf %3, %31 : vector<8x32xf32>
      %cst = arith.constant dense<0.000000e+00> : vector<8x32xf32>
      %33 = tpu.matmul %32, %4, %cst {dimension_numbers = #tpu.dot_dimension_numbers<[1], [1], [0], [0], [0, 0, 1, 0], [], []>} : vector<8x32xf32>, vector<32x32xf32>, vector<8x32xf32> -> vector<8x32xf32>
      %c0_15 = arith.constant 0 : index
      %c0_16 = arith.constant 0 : index
      %34 = vector.load %arg7[%c0_15, %c0_16] : memref<8x32xf32, #tpu.memory_space<vmem>>, vector<8x32xf32>
      %c1 = arith.constant 1 : index
      %c0_17 = arith.constant 0 : index
      %35 = vector.load %arg4[%c1, %c0_17] : memref<2x32xf32, #tpu.memory_space<vmem>>, vector<1x32xf32>
      %36 = vector.broadcast %35 : vector<1x32xf32> to vector<8x32xf32>
      %37 = arith.mulf %33, %36 : vector<8x32xf32>
      %38 = arith.addf %34, %37 : vector<8x32xf32>
      %c0_18 = arith.constant 0 : index
      %c0_19 = arith.constant 0 : index
      %39 = vector.load %arg7[%c0_18, %c0_19] : memref<8x32xf32, #tpu.memory_space<vmem>>, vector<8x32xf32>
      tpu.vector_store %arg7[%c0_18, %c0_19], %38 {strides = array<i32>} : memref<8x32xf32, #tpu.memory_space<vmem>>, vector<8x32xf32>,
    } else {
    }
    %c0_i32_11 = arith.constant 0 : i32
    %21 = arith.cmpi eq, %arg1, %c0_i32_11 : i32
    %22 = arith.extui %21 : i1 to i32
    %c0_i32_12 = arith.constant 0 : i32
    %23 = arith.cmpi ne, %22, %c0_i32_12 : i32
    scf.if %23 {
      %c0_13 = arith.constant 0 : index
      %c0_14 = arith.constant 0 : index
      %24 = vector.load %arg7[%c0_13, %c0_14] : memref<8x32xf32, #tpu.memory_space<vmem>>, vector<8x32xf32>
      %c0_15 = arith.constant 0 : index
      %c0_16 = arith.constant 0 : index
      %25 = vector.load %arg5[%c0_15, %c0_16] : memref<1x32xf32, #tpu.memory_space<vmem>>, vector<1x32xf32>
      %c0_17 = arith.constant 0 : index
      %c0_18 = arith.constant 0 : index
      %26 = vector.load %arg4[%c0_17, %c0_18] : memref<2x32xf32, #tpu.memory_space<vmem>>, vector<1x32xf32>
      %27 = arith.mulf %25, %26 : vector<1x32xf32>
      %28 = vector.broadcast %27 : vector<1x32xf32> to vector<8x32xf32>
      %29 = arith.addf %24, %28 : vector<8x32xf32>
      %c0_19 = arith.constant 0 : index
      %c0_20 = arith.constant 0 : index
      %30 = vector.load %arg6[%c0_19, %c0_20] : memref<8x32xf32, #tpu.memory_space<vmem>>, vector<8x32xf32>
      tpu.vector_store %arg6[%c0_19, %c0_20], %29 {strides = array<i32>} : memref<8x32xf32, #tpu.memory_space<vmem>>, vector<8x32xf32>,
    } else {
    }
    return
  }
  func.func @transform_0(%arg0: i32, %arg1: i32) -> (i32, i32) {
    %c0_i32 = arith.constant 0 : i32
    %c0_i32_0 = arith.constant 0 : i32
    return %c0_i32, %arg1 : i32, i32
  }
  func.func @transform_1(%arg0: i32, %arg1: i32) -> (i32, i32) {
    %c0_i32 = arith.constant 0 : i32
    return %arg0, %arg1 : i32, i32
  }
  func.func @transform_2(%arg0: i32, %arg1: i32) -> (i32, i32) {
    %c0_i32 = arith.constant 0 : i32
    %c0_i32_0 = arith.constant 0 : i32
    return %c0_i32, %arg0 : i32, i32
  }
  func.func @transform_3(%arg0: i32, %arg1: i32) -> (i32, i32) {
    %c0_i32 = arith.constant 0 : i32
    %c0_i32_0 = arith.constant 0 : i32
    return %c0_i32, %arg0 : i32, i32
  }
  func.func @transform_4(%arg0: i32, %arg1: i32) -> (i32, i32) {
    %c0_i32 = arith.constant 0 : i32
    %c0_i32_0 = arith.constant 0 : i32
    return %c0_i32, %arg0 : i32, i32
  }
}

</mosaic_0001>

<bundles_post_ra>
// kernel: tpu_custom_call.1
= control target key start
LH: loop header
LB: loop body
LE: loop exit
PB: predicated region body
PF: predicated region fallthrough
CT: control target
= control target key end

     0   :  { %9 = vsyncpa [#allocation4], 0  ;;  %s557_s0 = inlined_call_operand.hbm [shape: f32[8,32], index: 0, kind: input, shape index: {}]   ;;  %s558_s1 = inlined_call_operand.hbm [shape: f32[32,32], index: 1, kind: input, shape index: {}]   ;;  %s559_s2 = inlined_call_operand.vmem [shape: f32[2,32], index: 2, kind: input, shape index: {}]   ;;  %s560_s3 = inlined_call_operand.vmem [shape: f32[1,32], index: 3, kind: input, shape index: {}]   ;;  %s561_s4 = inlined_call_operand.hbm [shape: f32[8,32], index: 4, kind: output, shape index: {}]  }
   0x1   :  { %10 = vsyncpa [#allocation7], 0 }
   0x2   :  { %11 = vsyncpa [#allocation5], 0  ;;  %s449_s15 = smov [#allocation3]   ;;  %s450_s17 = smov [#allocation6]  }
   0x3   :  { %s18_s16 = sshll.u32 %s449_s15, 4  ;;  %s27_s18 = sshll.u32 %s450_s17, 4  ;;  %s19_s16 = int_to_ptr.vmem [resolvable:$true] %s18_s16  ;;  %s482_s18 = int_to_ptr.vmem [resolvable:$true] %s27_s18 }
   0x4   :  { %s377_s21 = scalar_lea.hbm %s557_s0, 128 }
   0x5   :  { %p378_p0 = scmp.ne.s32.totalorder %s557_s0, %s377_s21  ;;  %p381_p1 = scmp.lt.u32.totalorder %s377_s21, %s557_s0 }
   0x7   :  { %p383_p2 = pnand %p381_p1, %p378_p0 }
   0x9   :  { %386 = shalt.err (!%p383_p2)
}
   0xa   :  { %s387_s26 = scalar_lea.vmem %s19_s16, 128  ;;  %p392_p4 = scmp.lt.s32.totalorder %s19_s16, %s19_s16 }
   0xb   :  { %p388_p3 = scmp.ne.s32.totalorder %s19_s16, %s387_s26  ;;  %p393_p5 = scmp.lt.s32.totalorder %s387_s26, %s387_s26 }
   0xd   :  { %p394_p6 = por %p393_p5, %p392_p4 }
   0xf   :  { %p395_p7 = pnand %p394_p6, %p388_p3 }
  0x11   :  { %398 = shalt.err (!%p395_p7)
}
  0x12   :  { %21 = dma.hbm_to_vmem [thread:$0]  %s557_s0, 128, %s19_s16, [#allocation4]  }
  0x13   :  { %s399_s5 = scalar_lea.hbm %s558_s1, 512 }
  0x14   :  { %p400_p8 = scmp.ne.s32.totalorder %s558_s1, %s399_s5  ;;  %p403_p9 = scmp.lt.u32.totalorder %s399_s5, %s558_s1 }
  0x16   :  { %p405_p10 = pnand %p403_p9, %p400_p8 }
  0x18   :  { %408 = shalt.err (!%p405_p10)
}
  0x19   :  { %s409_s10 = scalar_lea.vmem %s482_s18, 512  ;;  %p414_p12 = scmp.lt.s32.totalorder %s482_s18, %s482_s18 }
  0x1a   :  { %p410_p11 = scmp.ne.s32.totalorder %s482_s18, %s409_s10  ;;  %p415_p13 = scmp.lt.s32.totalorder %s409_s10, %s409_s10 }
  0x1c   :  { %p416_p0 = por %p415_p13, %p414_p12 }
  0x1e   :  { %p417_p1 = pnand %p416_p0, %p410_p11 }
  0x20   :  { %420 = shalt.err (!%p417_p1)
}
  0x21   :  { %s451_s0 = smov 128   ;;  %s452_s11 = smov 8  }
  0x22   :  { %33 = dma.hbm_to_vmem [thread:$0]  %s558_s1, 512, %s482_s18, [#allocation7], %s451_s0, %s451_s0, %s452_s11  }
  0x23   :  { %443 = dma.done.wait [#allocation4], 128  }
  0x24   :  { %444 = vsyncadd [#allocation4], 4294967168 }
  0x25   :  { %445 = dma.done.wait [#allocation7], 512  }
  0x26   :  { %446 = vsyncadd [#allocation7], 4294966784  ;;  %vm48_vm0 = vcmask 261120   ;;  %v453_v0 = vmov 0.0|0.0   ;;  %v454_v1 = vmov 0.0   ;;  %vm455_vm1 = vmmov 0  }
  0x27   :  { %353 = vmatprep.subr.bf16.mxu0 %v453_v0  ;;  %361 = vmatprep.subr.bf16.mxu1 %v453_v0  ;;  %49 = vst.msk [vmem:[#allocation2] sm:$0xff] %vm48_vm0, %v454_v1  ;;  %v56_v2 = vlaneseq  ;;  %v51_v3 = vld [vmem:[#allocation6] sm:$0xff]  ;;  %v52_v4 = vld [vmem:[#allocation6 + $0x8] sm:$0xff]  ;;  %vm516_vm2 = vmpackc.low %vm48_vm0, %vm48_vm0  ;;  %s456_s21 = smov [#allocation8]  }
  0x28   :  { %339 = vmatprep.mubr.msk.f32.mxu0 %vm455_vm1, %v454_v1  ;;  %350 = vmatprep.mubr.msk.f32.mxu1 %vm455_vm1, %v454_v1  ;;  %v354_v6 = vpack.c.bf16 %v52_v4, %v51_v3  ;;  %v53_v8 = vld [vmem:[#allocation6 + $0x10] sm:$0xff]  ;;  %v54_v9 = vld [vmem:[#allocation6 + $0x18] sm:$0xff]  ;;  %s297_s22 = sshll.u32 %s456_s21, 4  ;;  %s298_s22 = int_to_ptr.vmem [resolvable:$true] %s297_s22 }
  0x29   :  { %v57_v7 = vand.u32 127, %v56_v2  ;;  %v358_v10 = vpack.c.bf16 %v54_v9, %v53_v8  ;;  %v50_v11 = vld [vmem:[#allocation3] sm:$0xff]  ;;  %v313_v16 = vld [vmem:[%s559_s2] ss:$0 sm:$0xff]  ;;  %v320_v24 = vld [vmem:[%s559_s2 + $0x1] ss:$0 sm:$0xff]  ;;  %p426_p3 = scmp.lt.s32.totalorder %s298_s22, %s298_s22 }
  0x2a   :  { %356 = vmatpush3.bf16.xpose.msk.msra.mxu0 %vm516_vm2, %v354_v6  ;;  %364 = vmatpush3.bf16.xpose.msk.msra.mxu1 %vm516_vm2, %v354_v6  ;;  %v284_v26 = vshrl.u32 %v56_v2, 7  ;;  %v279_v28 = vld [vmem:[%s560_s3] sm:$0x1]  ;;  %s421_s23 = scalar_lea.vmem %s298_s22, 128 }
  0x2b   :  { %357 = vmatprep.subr.bf16.mxu0 %v453_v0  ;;  %365 = vmatprep.subr.bf16.mxu1 %v453_v0  ;;  %vm174_vm3 = vcmp.ge.s32.totalorder %v57_v7, 16  ;;  %vm175_vm4 = vcmp.lt.s32.totalorder %v57_v7, 32  ;;  %vm68_vm5 = vcmp.lt.s32.totalorder %v57_v7, 16  ;;  %v280_v29 = vld [vmem:[%s559_s2] sm:$0x1]  ;;  %p422_p2 = scmp.ne.s32.totalorder %s298_s22, %s421_s23  ;;  %p427_p4 = scmp.lt.s32.totalorder %s421_s23, %s421_s23 }
  0x2c   :  { %vm176_vm6 = vmand %vm174_vm3, %vm175_vm4  ;;  %v307_v12 = vsel %vm68_vm5, 1.0, %v454_v1  ;;  %v281_v31 = vmul.f32 %v280_v29, %v279_v28  ;;  %v285_v32 = vsub.s32 0, %v284_v26 }
  0x2d   :  { %v314_v13 = vsel %vm176_vm6, 1.0, %v454_v1  ;;  %v72_v14 = vmul.f32 %v307_v12, %v50_v11  ;;  %p428_p5 = por %p427_p4, %p426_p3 }
  0x2e   :  { %v179_v15 = vmul.f32 %v314_v13, %v50_v11  ;;  %v159_v18 = vld [vmem:[#allocation2] sm:$0xff]  ;;  %v286_v33 = vrot.slane %v281_v31, %v285_v32 }
  0x2f   :  { %p429_p6 = pnand %p428_p5, %p422_p2 }
  0x32   :  { %360 = vmatpush3.bf16.xpose.msk.msra.mxu0 %vm516_vm2, %v358_v10  ;;  %368 = vmatpush3.bf16.xpose.msk.msra.mxu1 %vm516_vm2, %v358_v10 }
  0x39   :  { %340 = vmatmul.mubr.msk.f32.vlgmr.msra.gmra.mrb[0].mxu0 %vm48_vm0, %v72_v14  ;;  %351 = vmatmul.mubr.msk.f32.vlgmr.msra.gmra.mrb[0].mxu1 %vm48_vm0, %v179_v15 }
 0x10c   :  { %v155_v17 = vpop.f32.mrb[0].mxu0  ;;  %v262_v19 = vpop.f32.mrb[0].mxu1 }
 0x10d   :  { %v165_v20 = vmul.f32 %v313_v16, %v155_v17  ;;  %v341_v21 = vpop.f32.mrb[1].mxu0  ;;  %v352_v22 = vpop.f32.mrb[1].mxu1  ;;  %v272_v25 = vmul.f32 %v320_v24, %v262_v19 }
 0x10f   :  { %v166_v23 = vadd.f32 %v165_v20, %v159_v18 }
 0x111   :  { %167 = vst.msk [vmem:[#allocation2] sm:$0xff] %vm48_vm0, %v166_v23 }
 0x118   :  { %v266_v27 = vld [vmem:[#allocation2] sm:$0xff] }
 0x119   :  { %v273_v30 = vadd.f32 %v272_v25, %v266_v27 }
 0x11b   :  { %274 = vst.msk [vmem:[#allocation2] sm:$0xff] %vm48_vm0, %v273_v30 }
 0x122   :  { %v278_v34 = vld [vmem:[#allocation2] sm:$0xff] }
 0x123   :  { %v288_v35 = vadd.f32 %v286_v33, %v278_v34 }
 0x125   :  { %290 = vst.msk [vmem:[#allocation8] sm:$0xff] %vm48_vm0, %v288_v35 }
 0x126   :  { %432 = shalt.err (!%p429_p6)
}
 0x127   :  { %s433_s24 = scalar_lea.hbm %s561_s4, 128 }
 0x128   :  { %p434_p7 = scmp.ne.s32.totalorder %s561_s4, %s433_s24  ;;  %p437_p8 = scmp.lt.u32.totalorder %s433_s24, %s561_s4 }
 0x12a   :  { %p439_p9 = pnand %p437_p8, %p434_p7 }
 0x12c   :  { %442 = shalt.err (!%p439_p9)
}
 0x12d   :  { %300 = dma.vmem_to_hbm [thread:$0]  %s298_s22, 128, %s561_s4, [#allocation5]  }
 0x12e   :  { %447 = dma.done.wait [#allocation5], 128  }
 0x12f   :  { %448 = vsyncadd [#allocation5], 4294967168 }
 0x130   :  { %304 = vsyncpa [#allocation4], 1 }
 0x131   :  { %305 = vsyncpa [#allocation7], 1 }
 0x132   :  { %306 = vsyncpa [#allocation5], 1 }

</bundles_post_ra>
